<compile_context>
chip_gen: v7x
topology: tpu7x:2x2x1
jax: 0.10.0
libtpu: 0.0.40
codegen_flags: <defaults>
</compile_context>

<pallas_src>
import functools

import jax
import jax.numpy as jnp
from jax.experimental import pallas as pl
from jax.experimental.pallas import tpu as pltpu

BN_EPS = 1e-5

# Lane-aligned (padded) hidden widths: 100 -> 128, 200 -> 256, 400 -> 512.
D1, D2, D3 = 128, 256, 512


def _round_up(n, m=128):
    return ((n + m - 1) // m) * m


def _bn_relu(h, gamma, beta):
    """Training-mode BatchNorm1d (biased variance) + ReLU.

    Single reduction pass over the batch axis (sum and sum-of-squares
    together); gamma is folded into the normalization scale so the
    full-width work is one multiply + one add.  Padded columns (zeros with
    gamma=0, beta=0) stay exactly zero.
    """
    inv_b = 1.0 / h.shape[0]
    mean = jnp.sum(h, axis=0, keepdims=True) * inv_b
    meansq = jnp.sum(h * h, axis=0, keepdims=True) * inv_b
    var = jnp.maximum(meansq - mean * mean, 0.0)
    scale = gamma * jax.lax.rsqrt(var + BN_EPS)     # (1, N)
    shift = beta - mean * scale                     # (1, N)
    return jnp.maximum(h * scale + shift, 0.0)


def generator_kernel(x_ref, w1_ref, w2_ref, w3_ref, w4_ref, v_ref, o_ref, *, nf):
    # x_ref : (B, nz)   f32, unpadded
    # w1_ref: (nz, D1)  bf16 (cols 100 -> 128 zero-padded)
    # w2_ref: (D1, D2)  bf16 (100x200 -> 128x256 zero-padded)
    # w3_ref: (D2, D3)  bf16 (200x400 -> 256x512 zero-padded)
    # w4_ref: (D3, d4)  bf16 (400xnf  -> 512xd4 zero-padded)
    # v_ref : (8, L)    f32, row 0: g1, 1: be1, 2: g2, 3: be2,
    #                   row 4: g3, 5: be3, 6: b4, 7: unused
    #                   (pre-BN biases b1..b3 dropped: cancelled by the
    #                    BN mean subtraction)
    # o_ref : (B, nf)   f32
    x = x_ref[...]

    # Layer 1: Linear(nz -> 100) + BN + ReLU
    h = jnp.dot(x, w1_ref[...].astype(jnp.float32),
                preferred_element_type=jnp.float32)
    h = _bn_relu(h, v_ref[0:1, 0:D1], v_ref[1:2, 0:D1])

    # Layer 2: Linear(100 -> 200) + BN + ReLU
    h = jnp.dot(h, w2_ref[...].astype(jnp.float32),
                preferred_element_type=jnp.float32)
    h = _bn_relu(h, v_ref[2:3, 0:D2], v_ref[3:4, 0:D2])

    # Layer 3: Linear(200 -> 400) + BN + ReLU
    h = jnp.dot(h, w3_ref[...].astype(jnp.float32),
                preferred_element_type=jnp.float32)
    h = _bn_relu(h, v_ref[4:5, 0:D3], v_ref[5:6, 0:D3])

    # Layer 4: Linear(400 -> nf) with bias; lane-dense dot, masked final store
    out = jnp.dot(h, w4_ref[...].astype(jnp.float32),
                  preferred_element_type=jnp.float32)
    o_ref[...] = (out[:, :nf] + v_ref[6:7, 0:nf]).astype(o_ref.dtype)


@functools.partial(jax.jit, static_argnames=("nf",))
def generator_forward(x, packed, nf):
    w1p, w2p, w3p, w4p, vec = packed
    B, nz = x.shape
    x = x.astype(jnp.float32)

    # Advisory cost estimate: tiny, latency-dominated custom call.
    flops = 2 * B * (nz * D1 + D1 * D2 + D2 * D3 + D3 * w4p.shape[1])
    bytes_accessed = (
        x.size * 4
        + (w1p.size + w2p.size + w3p.size + w4p.size) * 2   # bf16 weights
        + vec.size * 4
        + B * nf * 4
    )
    cost = pl.CostEstimate(flops=flops,
                           transcendentals=D1 + D2 + D3,
                           bytes_accessed=bytes_accessed)

    kernel = functools.partial(generator_kernel, nf=nf)
    out = pl.pallas_call(
        kernel,
        out_shape=jax.ShapeDtypeStruct((B, nf), jnp.float32),
        in_specs=[pl.BlockSpec(memory_space=pltpu.MemorySpace.VMEM)] * 6,
        out_specs=pl.BlockSpec(memory_space=pltpu.MemorySpace.VMEM),
        cost_estimate=cost,
    )(x, w1p, w2p, w3p, w4p, vec)
    return out


def init_params(key, nz, nf):
    """Deterministic init matching PyTorch defaults:
    Linear: U(-1/sqrt(fan_in), 1/sqrt(fan_in)) for weight and bias.
    BatchNorm1d: weight=1, bias=0.
    Weights stored as (in, out) so the forward computes x @ W + b."""
    dims = [nz, 100, 200, 400, nf]
    params = []
    for i in range(4):
        fan_in, fan_out = dims[i], dims[i + 1]
        key, kw, kb = jax.random.split(key, 3)
        bound = 1.0 / jnp.sqrt(float(fan_in))
        w = jax.random.uniform(
            kw, (fan_in, fan_out), jnp.float32, minval=-bound, maxval=bound
        )
        b = jax.random.uniform(
            kb, (1, fan_out), jnp.float32, minval=-bound, maxval=bound
        )
        params.append(w)
        params.append(b)
        if i < 3:  # BatchNorm after the first three Linears
            params.append(jnp.ones((1, fan_out), jnp.float32))   # gamma
            params.append(jnp.zeros((1, fan_out), jnp.float32))  # beta
    return params


def pack_params(params, nz, nf):
    """One-time packing/padding of raw parameters into kernel operands.

    Weight matrices are stored in bfloat16 (halves HBM DMA per call, which
    dominates this launch/DMA-bound kernel); vectors stay f32."""
    (w1, b1, g1, be1, w2, b2, g2, be2, w3, b3, g3, be3, w4, b4) = params
    del b1, b2, b3  # exactly cancelled by training-mode BN mean subtraction

    d4 = _round_up(nf)
    L = max(D3, d4)

    def pad_w(w, rows, cols):
        w = jnp.pad(w, ((0, rows - w.shape[0]), (0, cols - w.shape[1])))
        return w.astype(jnp.bfloat16)

    def padv(v):
        v = v.reshape(1, -1)
        return jnp.pad(v, ((0, 0), (0, L - v.shape[1])))

    w1p = pad_w(w1, nz, D1)    # (nz, 128)
    w2p = pad_w(w2, D1, D2)    # (128, 256)
    w3p = pad_w(w3, D2, D3)    # (256, 512)
    w4p = pad_w(w4, D3, d4)    # (512, d4)
    vec = jnp.concatenate(
        [padv(g1), padv(be1), padv(g2), padv(be2), padv(g3), padv(be3),
         padv(b4), jnp.zeros((1, L), jnp.float32)],
        axis=0,
    )
    return w1p, w2p, w3p, w4p, vec


def reference_forward(x, params, weight_round_dtype=None):
    """Pure-JAX reference (with the original pre-BN biases).

    If weight_round_dtype is given, weight matrices are rounded through that
    dtype (to mirror the kernel's bf16 weight storage) so the comparison
    isolates kernel math from storage-precision effects."""
    (w1, b1, g1, be1, w2, b2, g2, be2, w3, b3, g3, be3, w4, b4) = params

    def rw(w):
        if weight_round_dtype is None:
            return w
        return w.astype(weight_round_dtype).astype(jnp.float32)

    def bn_relu(h, g, be):
        m = jnp.mean(h, axis=0, keepdims=True)
        v = jnp.mean((h - m) ** 2, axis=0, keepdims=True)
        return jnp.maximum((h - m) / jnp.sqrt(v + BN_EPS) * g + be, 0.0)

    h = bn_relu(x @ rw(w1) + b1, g1, be1)
    h = bn_relu(h @ rw(w2) + b2, g2, be2)
    h = bn_relu(h @ rw(w3) + b3, g3, be3)
    return h @ rw(w4) + b4


if __name__ == "__main__":
    nz, nf, batch = 32, 64, 8
    key = jax.random.PRNGKey(0)
    key, kx = jax.random.split(key)
    x = jax.random.normal(kx, (batch, nz), jnp.float32)
    params = init_params(key, nz, nf)
    packed = pack_params(params, nz, nf)

    out = generator_forward(x, packed, nf)
    out = jax.block_until_ready(out)

    ref = reference_forward(x, params, weight_round_dtype=jnp.bfloat16)
    assert out.shape == (batch, nf), out.shape
    max_err = float(jnp.max(jnp.abs(out - ref)))
    assert jnp.allclose(out, ref, atol=2e-3, rtol=2e-3), max_err

    # Looser sanity check against the full-f32 reference (bf16 weight storage
    # introduces ~1e-3-level differences by design).
    ref_f32 = reference_forward(x, params)
    assert jnp.allclose(out, ref_f32, atol=3e-2, rtol=3e-2)

    print("KERNEL_OK")
</pallas_src>

<mosaic_0001>
module attributes {stable_mosaic.version = 11 : i64} {
  func.func @generator_kernel(%arg0: memref<8x32xf32, #tpu.memory_space<vmem>>, %arg1: memref<32x128xbf16, #tpu.memory_space<vmem>>, %arg2: memref<128x256xbf16, #tpu.memory_space<vmem>>, %arg3: memref<256x512xbf16, #tpu.memory_space<vmem>>, %arg4: memref<512x128xbf16, #tpu.memory_space<vmem>>, %arg5: memref<8x512xf32, #tpu.memory_space<vmem>>, %arg6: memref<8x64xf32, #tpu.memory_space<vmem>>) attributes {dimension_semantics = [], scalar_prefetch = 0 : i64, scratch_operands = 0 : i64, tpu.core_type = #tpu.core_type<tc>} {
    %c0 = arith.constant 0 : index
    %c0_0 = arith.constant 0 : index
    %0 = vector.load %arg0[%c0, %c0_0] : memref<8x32xf32, #tpu.memory_space<vmem>>, vector<8x32xf32>
    %c0_1 = arith.constant 0 : index
    %c0_2 = arith.constant 0 : index
    %1 = vector.load %arg1[%c0_1, %c0_2] : memref<32x128xbf16, #tpu.memory_space<vmem>>, vector<32x128xbf16>
    %2 = arith.extf %1 : vector<32x128xbf16> to vector<32x128xf32>
    %cst = arith.constant dense<0.000000e+00> : vector<8x128xf32>
    %3 = tpu.matmul %0, %2, %cst {dimension_numbers = #tpu.dot_dimension_numbers<[1], [0], [0], [1], [0, 0, 1, 1], [], []>} : vector<8x32xf32>, vector<32x128xf32>, vector<8x128xf32> -> vector<8x128xf32>
    %c0_3 = arith.constant 0 : index
    %c0_4 = arith.constant 0 : index
    %4 = vector.load %arg5[%c0_3, %c0_4] : memref<8x512xf32, #tpu.memory_space<vmem>>, vector<1x128xf32>
    %c1 = arith.constant 1 : index
    %c0_5 = arith.constant 0 : index
    %5 = vector.load %arg5[%c1, %c0_5] : memref<8x512xf32, #tpu.memory_space<vmem>>, vector<1x128xf32>
    %cst_6 = arith.constant dense<0.000000e+00> : vector<128xf32>
    %6 = vector.multi_reduction <add>, %3, %cst_6 [0] : vector<8x128xf32> to vector<128xf32>
    %7 = vector.shape_cast %6 : vector<128xf32> to vector<1x128xf32>
    %cst_7 = arith.constant 1.250000e-01 : f32
    %8 = vector.broadcast %cst_7 : f32 to vector<1x128xf32>
    %9 = arith.mulf %7, %8 : vector<1x128xf32>
    %10 = arith.mulf %3, %3 : vector<8x128xf32>
    %cst_8 = arith.constant dense<0.000000e+00> : vector<128xf32>
    %11 = vector.multi_reduction <add>, %10, %cst_8 [0] : vector<8x128xf32> to vector<128xf32>
    %12 = vector.shape_cast %11 : vector<128xf32> to vector<1x128xf32>
    %cst_9 = arith.constant 1.250000e-01 : f32
    %13 = vector.broadcast %cst_9 : f32 to vector<1x128xf32>
    %14 = arith.mulf %12, %13 : vector<1x128xf32>
    %15 = arith.mulf %9, %9 : vector<1x128xf32>
    %16 = arith.subf %14, %15 : vector<1x128xf32>
    %cst_10 = arith.constant 0.000000e+00 : f32
    %17 = vector.broadcast %cst_10 : f32 to vector<1x128xf32>
    %18 = arith.maximumf %16, %17 : vector<1x128xf32>
    %cst_11 = arith.constant 9.99999974E-6 : f32
    %19 = vector.broadcast %cst_11 : f32 to vector<1x128xf32>
    %20 = arith.addf %18, %19 : vector<1x128xf32>
    %21 = math.rsqrt %20 : vector<1x128xf32>
    %22 = arith.mulf %4, %21 : vector<1x128xf32>
    %23 = arith.mulf %9, %22 : vector<1x128xf32>
    %24 = arith.subf %5, %23 : vector<1x128xf32>
    %25 = vector.broadcast %22 : vector<1x128xf32> to vector<8x128xf32>
    %26 = arith.mulf %3, %25 : vector<8x128xf32>
    %27 = vector.broadcast %24 : vector<1x128xf32> to vector<8x128xf32>
    %28 = arith.addf %26, %27 : vector<8x128xf32>
    %cst_12 = arith.constant 0.000000e+00 : f32
    %29 = vector.broadcast %cst_12 : f32 to vector<8x128xf32>
    %30 = arith.maximumf %28, %29 : vector<8x128xf32>
    %c0_13 = arith.constant 0 : index
    %c0_14 = arith.constant 0 : index
    %31 = vector.load %arg2[%c0_13, %c0_14] : memref<128x256xbf16, #tpu.memory_space<vmem>>, vector<128x256xbf16>
    %32 = arith.extf %31 : vector<128x256xbf16> to vector<128x256xf32>
    %cst_15 = arith.constant dense<0.000000e+00> : vector<8x256xf32>
    %33 = tpu.matmul %30, %32, %cst_15 {dimension_numbers = #tpu.dot_dimension_numbers<[1], [0], [0], [1], [0, 0, 1, 1], [], []>} : vector<8x128xf32>, vector<128x256xf32>, vector<8x256xf32> -> vector<8x256xf32>
    %c2 = arith.constant 2 : index
    %c0_16 = arith.constant 0 : index
    %34 = vector.load %arg5[%c2, %c0_16] : memref<8x512xf32, #tpu.memory_space<vmem>>, vector<1x256xf32>
    %c3 = arith.constant 3 : index
    %c0_17 = arith.constant 0 : index
    %35 = vector.load %arg5[%c3, %c0_17] : memref<8x512xf32, #tpu.memory_space<vmem>>, vector<1x256xf32>
    %cst_18 = arith.constant dense<0.000000e+00> : vector<256xf32>
    %36 = vector.multi_reduction <add>, %33, %cst_18 [0] : vector<8x256xf32> to vector<256xf32>
    %37 = vector.shape_cast %36 : vector<256xf32> to vector<1x256xf32>
    %cst_19 = arith.constant 1.250000e-01 : f32
    %38 = vector.broadcast %cst_19 : f32 to vector<1x256xf32>
    %39 = arith.mulf %37, %38 : vector<1x256xf32>
    %40 = arith.mulf %33, %33 : vector<8x256xf32>
    %cst_20 = arith.constant dense<0.000000e+00> : vector<256xf32>
    %41 = vector.multi_reduction <add>, %40, %cst_20 [0] : vector<8x256xf32> to vector<256xf32>
    %42 = vector.shape_cast %41 : vector<256xf32> to vector<1x256xf32>
    %cst_21 = arith.constant 1.250000e-01 : f32
    %43 = vector.broadcast %cst_21 : f32 to vector<1x256xf32>
    %44 = arith.mulf %42, %43 : vector<1x256xf32>
    %45 = arith.mulf %39, %39 : vector<1x256xf32>
    %46 = arith.subf %44, %45 : vector<1x256xf32>
    %cst_22 = arith.constant 0.000000e+00 : f32
    %47 = vector.broadcast %cst_22 : f32 to vector<1x256xf32>
    %48 = arith.maximumf %46, %47 : vector<1x256xf32>
    %cst_23 = arith.constant 9.99999974E-6 : f32
    %49 = vector.broadcast %cst_23 : f32 to vector<1x256xf32>
    %50 = arith.addf %48, %49 : vector<1x256xf32>
    %51 = math.rsqrt %50 : vector<1x256xf32>
    %52 = arith.mulf %34, %51 : vector<1x256xf32>
    %53 = arith.mulf %39, %52 : vector<1x256xf32>
    %54 = arith.subf %35, %53 : vector<1x256xf32>
    %55 = vector.broadcast %52 : vector<1x256xf32> to vector<8x256xf32>
    %56 = arith.mulf %33, %55 : vector<8x256xf32>
    %57 = vector.broadcast %54 : vector<1x256xf32> to vector<8x256xf32>
    %58 = arith.addf %56, %57 : vector<8x256xf32>
    %cst_24 = arith.constant 0.000000e+00 : f32
    %59 = vector.broadcast %cst_24 : f32 to vector<8x256xf32>
    %60 = arith.maximumf %58, %59 : vector<8x256xf32>
    %c0_25 = arith.constant 0 : index
    %c0_26 = arith.constant 0 : index
    %61 = vector.load %arg3[%c0_25, %c0_26] : memref<256x512xbf16, #tpu.memory_space<vmem>>, vector<256x512xbf16>
    %62 = arith.extf %61 : vector<256x512xbf16> to vector<256x512xf32>
    %cst_27 = arith.constant dense<0.000000e+00> : vector<8x512xf32>
    %63 = tpu.matmul %60, %62, %cst_27 {dimension_numbers = #tpu.dot_dimension_numbers<[1], [0], [0], [1], [0, 0, 1, 1], [], []>} : vector<8x256xf32>, vector<256x512xf32>, vector<8x512xf32> -> vector<8x512xf32>
    %c4 = arith.constant 4 : index
    %c0_28 = arith.constant 0 : index
    %64 = vector.load %arg5[%c4, %c0_28] : memref<8x512xf32, #tpu.memory_space<vmem>>, vector<1x512xf32>
    %c5 = arith.constant 5 : index
    %c0_29 = arith.constant 0 : index
    %65 = vector.load %arg5[%c5, %c0_29] : memref<8x512xf32, #tpu.memory_space<vmem>>, vector<1x512xf32>
    %cst_30 = arith.constant dense<0.000000e+00> : vector<512xf32>
    %66 = vector.multi_reduction <add>, %63, %cst_30 [0] : vector<8x512xf32> to vector<512xf32>
    %67 = vector.shape_cast %66 : vector<512xf32> to vector<1x512xf32>
    %cst_31 = arith.constant 1.250000e-01 : f32
    %68 = vector.broadcast %cst_31 : f32 to vector<1x512xf32>
    %69 = arith.mulf %67, %68 : vector<1x512xf32>
    %70 = arith.mulf %63, %63 : vector<8x512xf32>
    %cst_32 = arith.constant dense<0.000000e+00> : vector<512xf32>
    %71 = vector.multi_reduction <add>, %70, %cst_32 [0] : vector<8x512xf32> to vector<512xf32>
    %72 = vector.shape_cast %71 : vector<512xf32> to vector<1x512xf32>
    %cst_33 = arith.constant 1.250000e-01 : f32
    %73 = vector.broadcast %cst_33 : f32 to vector<1x512xf32>
    %74 = arith.mulf %72, %73 : vector<1x512xf32>
    %75 = arith.mulf %69, %69 : vector<1x512xf32>
    %76 = arith.subf %74, %75 : vector<1x512xf32>
    %cst_34 = arith.constant 0.000000e+00 : f32
    %77 = vector.broadcast %cst_34 : f32 to vector<1x512xf32>
    %78 = arith.maximumf %76, %77 : vector<1x512xf32>
    %cst_35 = arith.constant 9.99999974E-6 : f32
    %79 = vector.broadcast %cst_35 : f32 to vector<1x512xf32>
    %80 = arith.addf %78, %79 : vector<1x512xf32>
    %81 = math.rsqrt %80 : vector<1x512xf32>
    %82 = arith.mulf %64, %81 : vector<1x512xf32>
    %83 = arith.mulf %69, %82 : vector<1x512xf32>
    %84 = arith.subf %65, %83 : vector<1x512xf32>
    %85 = vector.broadcast %82 : vector<1x512xf32> to vector<8x512xf32>
    %86 = arith.mulf %63, %85 : vector<8x512xf32>
    %87 = vector.broadcast %84 : vector<1x512xf32> to vector<8x512xf32>
    %88 = arith.addf %86, %87 : vector<8x512xf32>
    %cst_36 = arith.constant 0.000000e+00 : f32
    %89 = vector.broadcast %cst_36 : f32 to vector<8x512xf32>
    %90 = arith.maximumf %88, %89 : vector<8x512xf32>
    %c0_37 = arith.constant 0 : index
    %c0_38 = arith.constant 0 : index
    %91 = vector.load %arg4[%c0_37, %c0_38] : memref<512x128xbf16, #tpu.memory_space<vmem>>, vector<512x128xbf16>
    %92 = arith.extf %91 : vector<512x128xbf16> to vector<512x128xf32>
    %cst_39 = arith.constant dense<0.000000e+00> : vector<8x128xf32>
    %93 = tpu.matmul %90, %92, %cst_39 {dimension_numbers = #tpu.dot_dimension_numbers<[1], [0], [0], [1], [0, 0, 1, 1], [], []>} : vector<8x512xf32>, vector<512x128xf32>, vector<8x128xf32> -> vector<8x128xf32>
    %94 = vector.extract_strided_slice %93 {offsets = [0, 0], sizes = [8, 64], strides = [1, 1]} : vector<8x128xf32> to vector<8x64xf32>
    %c6 = arith.constant 6 : index
    %c0_40 = arith.constant 0 : index
    %95 = vector.load %arg5[%c6, %c0_40] : memref<8x512xf32, #tpu.memory_space<vmem>>, vector<1x64xf32>
    %96 = vector.broadcast %95 : vector<1x64xf32> to vector<8x64xf32>
    %97 = arith.addf %94, %96 : vector<8x64xf32>
    %c0_41 = arith.constant 0 : index
    %c0_42 = arith.constant 0 : index
    %98 = vector.load %arg6[%c0_41, %c0_42] : memref<8x64xf32, #tpu.memory_space<vmem>>, vector<8x64xf32>
    tpu.vector_store %arg6[%c0_41, %c0_42], %97 {strides = array<i32>} : memref<8x64xf32, #tpu.memory_space<vmem>>, vector<8x64xf32>,
    return
  }
}

</mosaic_0001>

<bundles_post_ra>
// kernel: generator_forward.1
= control target key start
LH: loop header
LB: loop body
LE: loop exit
PB: predicated region body
PF: predicated region fallthrough
CT: control target
= control target key end

     0   :  { %11 = vsyncpa [#allocation3], 0  ;;  %s2358_s0 = inlined_call_operand.hbm [shape: f32[8,32], index: 0, kind: input, shape index: {}]   ;;  %s2359_s1 = inlined_call_operand.hbm [shape: bf16[32,128], index: 1, kind: input, shape index: {}]   ;;  %s2360_s2 = inlined_call_operand.hbm [shape: bf16[128,256], index: 2, kind: input, shape index: {}]   ;;  %s2361_s3 = inlined_call_operand.hbm [shape: bf16[256,512], index: 3, kind: input, shape index: {}]   ;;  %s2362_s4 = inlined_call_operand.hbm [shape: bf16[512,128], index: 4, kind: input, shape index: {}]   ;;  %s2363_s5 = inlined_call_operand.hbm [shape: f32[8,512], index: 5, kind: input, shape index: {}]   ;;  %s2364_s6 = inlined_call_operand.hbm [shape: f32[8,64], index: 6, kind: output, shape index: {}]  }
   0x1   :  { %12 = vsyncpa [#allocation6], 0 }
   0x2   :  { %13 = vsyncpa [#allocation9], 0 }
   0x3   :  { %14 = vsyncpa [#allocation12], 0 }
   0x4   :  { %15 = vsyncpa [#allocation4], 0  ;;  %s2150_s21 = smov [#allocation5]   ;;  %s1986_s25 = scalar_lea.hbm %s2359_s1, 256 }
   0x5   :  { %s31_s22 = sshll.u32 %s2150_s21, 4  ;;  %p1987_p0 = scmp.ne.s32.totalorder %s2359_s1, %s1986_s25  ;;  %s32_s22 = int_to_ptr.vmem [resolvable:$true] %s31_s22 }
   0x6   :  { %p1990_p1 = scmp.lt.u32.totalorder %s1986_s25, %s2359_s1 }
   0x8   :  { %p1992_p2 = pnand %p1990_p1, %p1987_p0 }
   0xa   :  { %1995 = shalt.err (!%p1992_p2)
}
   0xb   :  { %s1996_s30 = scalar_lea.vmem %s32_s22, 256  ;;  %p2001_p4 = scmp.lt.s32.totalorder %s32_s22, %s32_s22 }
   0xc   :  { %p1997_p3 = scmp.ne.s32.totalorder %s32_s22, %s1996_s30  ;;  %p2002_p5 = scmp.lt.s32.totalorder %s1996_s30, %s1996_s30 }
   0xe   :  { %p2003_p6 = por %p2002_p5, %p2001_p4 }
  0x10   :  { %p2004_p7 = pnand %p2003_p6, %p1997_p3 }
  0x12   :  { %2007 = shalt.err (!%p2004_p7)
}
  0x13   :  { %s2151_s7 = smov 64   ;;  %s2152_s8 = smov 4  }
  0x14   :  { %37 = dma.hbm_to_vmem [thread:$0]  %s2359_s1, 256, %s32_s22, [#allocation6], %s2151_s7, %s2151_s7, %s2152_s8  }
  0x15   :  { %s2153_s11 = smov [#allocation8]   ;;  %s2008_s15 = scalar_lea.hbm %s2361_s3, 8192 }
  0x16   :  { %s55_s12 = sshll.u32 %s2153_s11, 4  ;;  %p2009_p8 = scmp.ne.s32.totalorder %s2361_s3, %s2008_s15  ;;  %s56_s12 = int_to_ptr.vmem [resolvable:$true] %s55_s12 }
  0x17   :  { %p2012_p9 = scmp.lt.u32.totalorder %s2008_s15, %s2361_s3 }
  0x19   :  { %p2014_p10 = pnand %p2012_p9, %p2009_p8 }
  0x1b   :  { %2017 = shalt.err (!%p2014_p10)
}
  0x1c   :  { %s2018_s20 = scalar_lea.vmem %s56_s12, 8192  ;;  %p2023_p12 = scmp.lt.s32.totalorder %s56_s12, %s56_s12 }
  0x1d   :  { %p2019_p11 = scmp.ne.s32.totalorder %s56_s12, %s2018_s20  ;;  %p2024_p13 = scmp.lt.s32.totalorder %s2018_s20, %s2018_s20 }
  0x1f   :  { %p2025_p0 = por %p2024_p13, %p2023_p12 }
  0x21   :  { %p2026_p1 = pnand %p2025_p0, %p2019_p11 }
  0x23   :  { %2029 = shalt.err (!%p2026_p1)
}
  0x24   :  { %s2154_s1 = smov 256   ;;  %s2155_s21 = smov 16  }
  0x25   :  { %61 = dma.hbm_to_vmem [thread:$0]  %s2361_s3, 8192, %s56_s12, [#allocation9], %s2154_s1, %s2154_s1, %s2155_s21  }
  0x26   :  { %s2156_s24 = smov [#allocation2]   ;;  %s2157_s26 = smov [#allocation7]  }
  0x27   :  { %s22_s25 = sshll.u32 %s2156_s24, 4  ;;  %s43_s27 = sshll.u32 %s2157_s26, 4  ;;  %s23_s25 = int_to_ptr.vmem [resolvable:$true] %s22_s25  ;;  %s2229_s27 = int_to_ptr.vmem [resolvable:$true] %s43_s27 }
  0x28   :  { %s2030_s30 = scalar_lea.hbm %s2358_s0, 128 }
  0x29   :  { %p2031_p2 = scmp.ne.s32.totalorder %s2358_s0, %s2030_s30  ;;  %p2034_p3 = scmp.lt.u32.totalorder %s2030_s30, %s2358_s0 }
  0x2b   :  { %p2036_p4 = pnand %p2034_p3, %p2031_p2 }
  0x2d   :  { %2039 = shalt.err (!%p2036_p4)
}
  0x2e   :  { %s2040_s3 = scalar_lea.vmem %s23_s25, 128  ;;  %p2045_p6 = scmp.lt.s32.totalorder %s23_s25, %s23_s25 }
  0x2f   :  { %p2041_p5 = scmp.ne.s32.totalorder %s23_s25, %s2040_s3  ;;  %p2046_p7 = scmp.lt.s32.totalorder %s2040_s3, %s2040_s3 }
  0x31   :  { %p2047_p8 = por %p2046_p7, %p2045_p6 }
  0x33   :  { %p2048_p9 = pnand %p2047_p8, %p2041_p5 }
  0x35   :  { %2051 = shalt.err (!%p2048_p9)
}
  0x36   :  { %25 = dma.hbm_to_vmem [thread:$0]  %s2358_s0, 128, %s23_s25, [#allocation3]  }
  0x37   :  { %s2052_s17 = scalar_lea.hbm %s2360_s2, 2048 }
  0x38   :  { %p2053_p10 = scmp.ne.s32.totalorder %s2360_s2, %s2052_s17  ;;  %p2056_p11 = scmp.lt.u32.totalorder %s2052_s17, %s2360_s2 }
  0x3a   :  { %p2058_p12 = pnand %p2056_p11, %p2053_p10 }
  0x3c   :  { %2061 = shalt.err (!%p2058_p12)
}
  0x3d   :  { %s2062_s21 = scalar_lea.vmem %s2229_s27, 2048  ;;  %p2067_p0 = scmp.lt.s32.totalorder %s2229_s27, %s2229_s27 }
  0x3e   :  { %p2063_p13 = scmp.ne.s32.totalorder %s2229_s27, %s2062_s21  ;;  %p2068_p1 = scmp.lt.s32.totalorder %s2062_s21, %s2062_s21 }
  0x40   :  { %p2069_p2 = por %p2068_p1, %p2067_p0 }
  0x42   :  { %p2070_p3 = pnand %p2069_p2, %p2063_p13 }
  0x44   :  { %2073 = shalt.err (!%p2070_p3)
}
  0x45   :  { %s2158_s0 = smov 128   ;;  %s2159_s22 = smov 8  }
  0x46   :  { %49 = dma.hbm_to_vmem [thread:$0]  %s2360_s2, 2048, %s2229_s27, [#allocation6], %s2158_s0, %s2158_s0, %s2159_s22  }
  0x47   :  { %s2160_s25 = smov [#allocation10]   ;;  %s2161_s28 = smov [#allocation11]  }
  0x48   :  { %s67_s26 = sshll.u32 %s2160_s25, 4  ;;  %s80_s29 = sshll.u32 %s2161_s28, 4  ;;  %s68_s26 = int_to_ptr.vmem [resolvable:$true] %s67_s26  ;;  %s81_s29 = int_to_ptr.vmem [resolvable:$true] %s80_s29 }
  0x49   :  { %s2074_s10 = scalar_lea.hbm %s2362_s4, 4096 }
  0x4a   :  { %p2075_p4 = scmp.ne.s32.totalorder %s2362_s4, %s2074_s10  ;;  %p2078_p5 = scmp.lt.u32.totalorder %s2074_s10, %s2362_s4 }
  0x4c   :  { %p2080_p6 = pnand %p2078_p5, %p2075_p4 }
  0x4e   :  { %2083 = shalt.err (!%p2080_p6)
}
  0x4f   :  { %s2084_s2 = scalar_lea.vmem %s68_s26, 4096  ;;  %p2089_p8 = scmp.lt.s32.totalorder %s68_s26, %s68_s26 }
  0x50   :  { %p2085_p7 = scmp.ne.s32.totalorder %s68_s26, %s2084_s2  ;;  %p2090_p9 = scmp.lt.s32.totalorder %s2084_s2, %s2084_s2 }
  0x52   :  { %p2091_p10 = por %p2090_p9, %p2089_p8 }
  0x54   :  { %p2092_p11 = pnand %p2091_p10, %p2085_p7 }
  0x56   :  { %2095 = shalt.err (!%p2092_p11)
}
  0x57   :  { %73 = dma.hbm_to_vmem [thread:$0]  %s2362_s4, 4096, %s68_s26, [#allocation9], %s2151_s7, %s2151_s7, %s2152_s8  }
  0x58   :  { %s2096_s17 = scalar_lea.hbm %s2363_s5, 512 }
  0x59   :  { %p2097_p12 = scmp.ne.s32.totalorder %s2363_s5, %s2096_s17  ;;  %p2100_p13 = scmp.lt.u32.totalorder %s2096_s17, %s2363_s5 }
  0x5b   :  { %p2102_p0 = pnand %p2100_p13, %p2097_p12 }
  0x5d   :  { %2105 = shalt.err (!%p2102_p0)
}
  0x5e   :  { %s2106_s21 = scalar_lea.vmem %s81_s29, 512  ;;  %p2111_p2 = scmp.lt.s32.totalorder %s81_s29, %s81_s29 }
  0x5f   :  { %p2107_p1 = scmp.ne.s32.totalorder %s81_s29, %s2106_s21  ;;  %p2112_p3 = scmp.lt.s32.totalorder %s2106_s21, %s2106_s21 }
  0x61   :  { %p2113_p4 = por %p2112_p3, %p2111_p2 }
  0x63   :  { %p2114_p5 = pnand %p2113_p4, %p2107_p1 }
  0x65   :  { %2117 = shalt.err (!%p2114_p5)
}
  0x66   :  { %83 = dma.hbm_to_vmem [thread:$0]  %s2363_s5, 512, %s81_s29, [#allocation12]  }
  0x67   :  { %2140 = dma.done.wait [#allocation3], 128  }
  0x68   :  { %2141 = vsyncadd [#allocation3], 4294967168 }
  0x69   :  { %2142 = dma.done.wait [#allocation6], 2304  }
  0x6a   :  { %2143 = vsyncadd [#allocation6], 4294964992 }
  0x6b   :  { %2144 = dma.done.wait [#allocation9], 12288  }
  0x6c   :  { %2145 = vsyncadd [#allocation9], 4294955008 }
  0x6d   :  { %2146 = dma.done.wait [#allocation12], 512  }
  0x6e   :  { %2147 = vsyncadd [#allocation12], 4294966784  ;;  %v2162_v0 = vmov 0.0|0.0   ;;  %vm2163_vm0 = vmmov 0   ;;  %v2164_v1 = vmov 0.0   ;;  %v1272_v2 = vld [vmem:[#allocation5] sm:$0xff]  }
  0x6f   :  { %1525 = vmatprep.subr.bf16.mxu0 %v2162_v0  ;;  %1522 = vmatprep.mubr.msk.f32.mxu0 %vm2163_vm0, %v2164_v1  ;;  %v1407_v3 = vld [vmem:[#allocation5 + $0x8] sm:$0xff]   ;;  %v102_v4 = vld [vmem:[#allocation2] sm:$0xff]  ;;  %vm111_vm1 = vcmask 261120   ;;  %v1876_v21 = vld [vmem:[#allocation8 + $0x4] ss:$16 sps:$4 sm:$0xff]   ;;  %s2166_s5 = smov [#allocation13]  }
  0x70   :  { %325 = vmatprep.mubr.f32.mxu1 %v2164_v1  ;;  %1527 = vmatpush3.bf16.msra.mxu0 %v1272_v2  ;;  %v1852_v5 = vld [vmem:[#allocation7 + $0x4] ss:$8 sps:$4 sm:$0xff]   ;;  %v1854_v6 = vld [vmem:[#allocation7] ss:$8 sps:$4 sm:$0xff]   ;;  %v1855_v7 = vld [vmem:[#allocation7 + $0x14] ss:$8 sps:$4 sm:$0xff]  }
  0x71   :  { %1528 = vmatprep.subr.bf16.mxu0 %v2162_v0  ;;  %1532 = vmatprep.subr.bf16.mxu1 %v1852_v5  ;;  %v1857_v8 = vld [vmem:[#allocation7 + $0x10] ss:$8 sps:$4 sm:$0xff]   ;;  %v1858_v9 = vld [vmem:[#allocation7 + $0x24] ss:$8 sps:$4 sm:$0xff]   ;;  %v1860_v10 = vld [vmem:[#allocation7 + $0x20] ss:$8 sps:$4 sm:$0xff]  }
  0x72   :  { %1534 = vmatpush1.bf16.msra.mxu1 %v1854_v6  ;;  %v1861_v11 = vld [vmem:[#allocation7 + $0x34] ss:$8 sps:$4 sm:$0xff]   ;;  %v1863_v12 = vld [vmem:[#allocation7 + $0x30] ss:$8 sps:$4 sm:$0xff]   ;;  %v1864_v13 = vld [vmem:[#allocation7 + $0x44] ss:$8 sps:$4 sm:$0xff]  }
  0x73   :  { %1536 = vmatprep.subr.bf16.mxu1 %v1855_v7  ;;  %v1866_v14 = vld [vmem:[#allocation7 + $0x40] ss:$8 sps:$4 sm:$0xff]   ;;  %v1867_v15 = vld [vmem:[#allocation7 + $0x54] ss:$8 sps:$4 sm:$0xff]   ;;  %v1869_v16 = vld [vmem:[#allocation7 + $0x50] ss:$8 sps:$4 sm:$0xff]  }
  0x74   :  { %1530 = vmatpush3.bf16.msra.mxu0 %v1407_v3  ;;  %v1870_v17 = vld [vmem:[#allocation7 + $0x64] ss:$8 sps:$4 sm:$0xff]   ;;  %v1872_v18 = vld [vmem:[#allocation7 + $0x60] ss:$8 sps:$4 sm:$0xff]   ;;  %v1873_v19 = vld [vmem:[#allocation7 + $0x74] ss:$8 sps:$4 sm:$0xff]  }
  0x75   :  { %v1875_v20 = vld [vmem:[#allocation7 + $0x70] ss:$8 sps:$4 sm:$0xff]   ;;  %v1879_v23 = vld [vmem:[#allocation8 + $0xc] ss:$16 sps:$4 sm:$0xff]   ;;  %1564 = vmatprep.subr.bf16.mxu0 %v1876_v21  ;;  %v185_v45 = vld [vmem:[#allocation11] ss:$0 sm:$0xff] }
  0x76   :  { %1538 = vmatpush1.bf16.msra.mxu1 %v1857_v8  ;;  %v1878_v22 = vld [vmem:[#allocation8] ss:$16 sps:$4 sm:$0xff]   ;;  %v1881_v53 = vld [vmem:[#allocation8 + $0x8] ss:$16 sps:$4 sm:$0xff]   ;;  %v1882_v55 = vld [vmem:[#allocation8 + $0x24] ss:$16 sps:$4 sm:$0xff]  }
  0x77   :  { %1523 = vmatmul.mubr.msk.f32.vlgmr.msra.gmra.mrb[0].mxu0 %vm111_vm1, %v102_v4  ;;  %1540 = vmatprep.subr.bf16.mxu1 %v1858_v9  ;;  %v186_v48 = vld [vmem:[#allocation11 + $0x1] ss:$0 sm:$0xff]  ;;  %v1885_v56 = vld [vmem:[#allocation8 + $0x2c] ss:$16 sps:$4 sm:$0xff]   ;;  %v1887_v58 = vld [vmem:[#allocation8 + $0x28] ss:$16 sps:$4 sm:$0xff]  }
  0x78   :  { %1566 = vmatpush1.bf16.msra.mxu0 %v1878_v22  ;;  %v1884_v57 = vld [vmem:[#allocation8 + $0x20] ss:$16 sps:$4 sm:$0xff]   ;;  %v1888_v59 = vld [vmem:[#allocation8 + $0x44] ss:$16 sps:$4 sm:$0xff]   ;;  %v1891_v60 = vld [vmem:[#allocation8 + $0x4c] ss:$16 sps:$4 sm:$0xff]  }
  0x79   :  { %1568 = vmatprep.subr.bf16.mxu0 %v1882_v55  ;;  %v1890_v61 = vld [vmem:[#allocation8 + $0x40] ss:$16 sps:$4 sm:$0xff]   ;;  %v1893_v62 = vld [vmem:[#allocation8 + $0x48] ss:$16 sps:$4 sm:$0xff]   ;;  %v1894_v63 = vld [vmem:[#allocation8 + $0x64] ss:$16 sps:$4 sm:$0xff]  }
  0x7a   :  { %1542 = vmatpush1.bf16.msra.mxu1 %v1860_v10  ;;  %v1897_v0 = vld [vmem:[#allocation8 + $0x6c] ss:$16 sps:$4 sm:$0xff]   ;;  %v1896_v1 = vld [vmem:[#allocation8 + $0x60] ss:$16 sps:$4 sm:$0xff]   ;;  %v1899_v2 = vld [vmem:[#allocation8 + $0x68] ss:$16 sps:$4 sm:$0xff]  }
  0x7b   :  { %1544 = vmatprep.subr.bf16.mxu1 %v1861_v11  ;;  %v1900_v3 = vld [vmem:[#allocation8 + $0x84] ss:$16 sps:$4 sm:$0xff]   ;;  %v1903_v4 = vld [vmem:[#allocation8 + $0x8c] ss:$16 sps:$4 sm:$0xff]   ;;  %v1902_v5 = vld [vmem:[#allocation8 + $0x80] ss:$16 sps:$4 sm:$0xff]  }
  0x7c   :  { %1570 = vmatpush1.bf16.msra.mxu0 %v1884_v57  ;;  %v1905_v6 = vld [vmem:[#allocation8 + $0x88] ss:$16 sps:$4 sm:$0xff]   ;;  %v1906_v7 = vld [vmem:[#allocation8 + $0xa4] ss:$16 sps:$4 sm:$0xff]   ;;  %v1909_v8 = vld [vmem:[#allocation8 + $0xac] ss:$16 sps:$4 sm:$0xff]  }
  0x7d   :  { %1572 = vmatprep.subr.bf16.mxu0 %v1888_v59  ;;  %v1908_v9 = vld [vmem:[#allocation8 + $0xa0] ss:$16 sps:$4 sm:$0xff]   ;;  %v1911_v10 = vld [vmem:[#allocation8 + $0xa8] ss:$16 sps:$4 sm:$0xff]   ;;  %v1912_v11 = vld [vmem:[#allocation8 + $0xc4] ss:$16 sps:$4 sm:$0xff]  }
  0x7e   :  { %1546 = vmatpush1.bf16.msra.mxu1 %v1863_v12  ;;  %v1915_v12 = vld [vmem:[#allocation8 + $0xcc] ss:$16 sps:$4 sm:$0xff]   ;;  %v1926_v21 = vld [vmem:[#allocation8 + $0x100] ss:$16 sps:$4 sm:$0xff]   ;;  %v1929_v22 = vld [vmem:[#allocation8 + $0x108] ss:$16 sps:$4 sm:$0xff]  }
  0x7f   :  { %1548 = vmatprep.subr.bf16.mxu1 %v1864_v13  ;;  %v1914_v13 = vld [vmem:[#allocation8 + $0xc0] ss:$16 sps:$4 sm:$0xff]   ;;  %s1258_s8 = sshll.u32 %s2166_s5, 4  ;;  %vm1250_vm2 = vcmask 523264   ;;  %s1259_s8 = int_to_ptr.vmem [resolvable:$true] %s1258_s8 }
  0x80   :  { %1574 = vmatpush1.bf16.msra.mxu0 %v1890_v61  ;;  %s2118_s0 = scalar_lea.vmem %s1259_s8, 128  ;;  %p2123_p7 = scmp.lt.s32.totalorder %s1259_s8, %s1259_s8 }
  0x81   :  { %1576 = vmatprep.subr.bf16.mxu0 %v1894_v63  ;;  %p2119_p6 = scmp.ne.s32.totalorder %s1259_s8, %s2118_s0  ;;  %p2124_p8 = scmp.lt.s32.totalorder %s2118_s0, %s2118_s0 }
  0x82   :  { %1550 = vmatpush1.bf16.msra.mxu1 %v1866_v14  ;;  %v1917_v14 = vld [vmem:[#allocation8 + $0xc8] ss:$16 sps:$4 sm:$0xff]  }
  0x83   :  { %1552 = vmatprep.subr.bf16.mxu1 %v1867_v15  ;;  %v1918_v15 = vld [vmem:[#allocation8 + $0xe4] ss:$16 sps:$4 sm:$0xff]   ;;  %p2125_p9 = por %p2124_p8, %p2123_p7 }
  0x84   :  { %1578 = vmatpush1.bf16.msra.mxu0 %v1896_v1 }
  0x85   :  { %1580 = vmatprep.subr.bf16.mxu0 %v1900_v3  ;;  %p2126_p10 = pnand %p2125_p9, %p2119_p6 }
  0x86   :  { %1554 = vmatpush1.bf16.msra.mxu1 %v1869_v16  ;;  %v1921_v16 = vld [vmem:[#allocation8 + $0xec] ss:$16 sps:$4 sm:$0xff]  }
  0x87   :  { %1556 = vmatprep.subr.bf16.mxu1 %v1870_v17  ;;  %v1920_v17 = vld [vmem:[#allocation8 + $0xe0] ss:$16 sps:$4 sm:$0xff]  }
  0x88   :  { %1582 = vmatpush1.bf16.msra.mxu0 %v1902_v5 }
  0x89   :  { %1584 = vmatprep.subr.bf16.mxu0 %v1906_v7 }
  0x8a   :  { %1558 = vmatpush1.bf16.msra.mxu1 %v1872_v18  ;;  %v1923_v18 = vld [vmem:[#allocation8 + $0xe8] ss:$16 sps:$4 sm:$0xff]  }
  0x8b   :  { %1560 = vmatprep.subr.bf16.mxu1 %v1873_v19  ;;  %v1924_v19 = vld [vmem:[#allocation8 + $0x104] ss:$16 sps:$4 sm:$0xff]  }
  0x8c   :  { %1586 = vmatpush1.bf16.msra.mxu0 %v1908_v9 }
  0x8d   :  { %1588 = vmatprep.subr.bf16.mxu0 %v1912_v11 }
  0x8e   :  { %1562 = vmatpush1.bf16.msra.mxu1 %v1875_v20  ;;  %v1927_v20 = vld [vmem:[#allocation8 + $0x10c] ss:$16 sps:$4 sm:$0xff]  }
  0x8f   :  { %1628 = vmatprep.subr.bf16.mxu1 %v1879_v23  ;;  %v1930_v23 = vld [vmem:[#allocation8 + $0x124] ss:$16 sps:$4 sm:$0xff]  }
  0x90   :  { %1590 = vmatpush1.bf16.msra.mxu0 %v1914_v13 }
  0x91   :  { %1592 = vmatprep.subr.bf16.mxu0 %v1918_v15 }
  0x94   :  { %1594 = vmatpush1.bf16.msra.mxu0 %v1920_v17 }
  0x95   :  { %1596 = vmatprep.subr.bf16.mxu0 %v1924_v19 }
  0x98   :  { %1598 = vmatpush1.bf16.msra.mxu0 %v1926_v21 }
  0x99   :  { %1600 = vmatprep.subr.bf16.mxu0 %v1930_v23 }
 0x14a   :  { %v181_v24 = vpop.f32.mrb[0].mxu0 }
 0x14b   :  { %v187_v25 = vrot.slane %v181_v24, 4  ;;  %v194_v26 = vmul.f32 %v181_v24, %v181_v24  ;;  %v1524_v27 = vpop.f32.mrb[1].mxu0 }
 0x14c   :  { %v1936_v27 = vld [vmem:[#allocation8 + $0x144] ss:$16 sps:$4 sm:$0xff]  }
 0x14d   :  { %v188_v28 = vadd.f32 %v187_v25, %v181_v24  ;;  %v195_v29 = vrot.slane %v194_v26, 4  ;;  %v1932_v25 = vld [vmem:[#allocation8 + $0x120] ss:$16 sps:$4 sm:$0xff]  }
 0x14e   :  { %1602 = vmatpush1.bf16.msra.mxu0 %v1932_v25 }
 0x14f   :  { %v189_v30 = vrot.slane %v188_v28, 2  ;;  %v196_v31 = vadd.f32 %v195_v29, %v194_v26  ;;  %v1935_v26 = vld [vmem:[#allocation8 + $0x128] ss:$16 sps:$4 sm:$0xff]   ;;  %v1938_v29 = vld [vmem:[#allocation8 + $0x140] ss:$16 sps:$4 sm:$0xff]   ;;  %1604 = vmatprep.subr.bf16.mxu0 %v1936_v27 }
 0x150   :  { %v2165_v27 = vmov 1966171168  }
 0x151   :  { %v190_v32 = vadd.f32 %v189_v30, %v188_v28  ;;  %v197_v33 = vrot.slane %v196_v31, 2  ;;  %v1939_v28 = vld [vmem:[#allocation8 + $0x14c] ss:$16 sps:$4 sm:$0xff]   ;;  %v1941_v30 = vld [vmem:[#allocation8 + $0x148] ss:$16 sps:$4 sm:$0xff]  }
 0x152   :  { %1606 = vmatpush1.bf16.msra.mxu0 %v1938_v29  ;;  %v382_v29 = vlaneseq }
 0x153   :  { %v191_v34 = vrot.slane %v190_v32, 1  ;;  %v198_v35 = vadd.f32 %v197_v33, %v196_v31  ;;  %v1942_v31 = vld [vmem:[#allocation8 + $0x164] ss:$16 sps:$4 sm:$0xff]   ;;  %v1944_v33 = vld [vmem:[#allocation8 + $0x160] ss:$16 sps:$4 sm:$0xff]  }
 0x154   :  { %1608 = vmatprep.subr.bf16.mxu0 %v1942_v31  ;;  %v2287_v31 = vshrl.u32 %v382_v29, 7 }
 0x155   :  { %v192_v36 = vadd.f32 %v191_v34, %v190_v32  ;;  %v199_v37 = vrot.slane %v198_v35, 1  ;;  %v1945_v32 = vld [vmem:[#allocation8 + $0x16c] ss:$16 sps:$4 sm:$0xff]   ;;  %v1947_v34 = vld [vmem:[#allocation8 + $0x168] ss:$16 sps:$4 sm:$0xff]  }
 0x156   :  { %1610 = vmatpush1.bf16.msra.mxu0 %v1944_v33 }
 0x157   :  { %v193_v38 = vmul.f32 0.125, %v192_v36  ;;  %v200_v39 = vadd.f32 %v199_v37, %v198_v35  ;;  %v1948_v35 = vld [vmem:[#allocation8 + $0x184] ss:$16 sps:$4 sm:$0xff]   ;;  %v1951_v36 = vld [vmem:[#allocation8 + $0x18c] ss:$16 sps:$4 sm:$0xff]  }
 0x158   :  { %v1950_v37 = vld [vmem:[#allocation8 + $0x180] ss:$16 sps:$4 sm:$0xff]   ;;  %1612 = vmatprep.subr.bf16.mxu0 %v1948_v35 }
 0x159   :  { %v201_v40 = vmul.f32 0.125, %v200_v39  ;;  %v202_v41 = vmul.f32 %v193_v38, %v193_v38  ;;  %v1954_v39 = vld [vmem:[#allocation8 + $0x1a4] ss:$16 sps:$4 sm:$0xff]  }
 0x15a   :  { %1614 = vmatpush1.bf16.msra.mxu0 %v1950_v37  ;;  %v333_v37 = vld [vmem:[#allocation11 + $0x2] ss:$8 sm:$0x3] }
 0x15b   :  { %v203_v42 = vsub.f32 %v201_v40, %v202_v41  ;;  %v1956_v40 = vld [vmem:[#allocation8 + $0x1a0] ss:$16 sps:$4 sm:$0xff]   ;;  %v1957_v41 = vld [vmem:[#allocation8 + $0x1ac] ss:$16 sps:$4 sm:$0xff]   ;;  %1616 = vmatprep.subr.bf16.mxu0 %v1954_v39  ;;  %v2295_v39 = vsub.s32 0, %v2287_v31 }
 0x15d   :  { %v204_v43 = vmax.f32 %v203_v42, 0.0  ;;  %v1959_v42 = vld [vmem:[#allocation8 + $0x1a8] ss:$16 sps:$4 sm:$0xff]  }
 0x15e   :  { %1618 = vmatpush1.bf16.msra.mxu0 %v1956_v40  ;;  %v2298_v40 = vsub.s32 1, %v2287_v31 }
 0x15f   :  { %v205_v44 = vadd.f32 1e-05, %v204_v43  ;;  %v1960_v43 = vld [vmem:[#allocation8 + $0x1c4] ss:$16 sps:$4 sm:$0xff]  }
 0x160   :  { %1620 = vmatprep.subr.bf16.mxu0 %v1960_v43 }
 0x161   :  { %1972 = vrsqrt.f32 %v205_v44  ;;  %v1963_v44 = vld [vmem:[#allocation8 + $0x1cc] ss:$16 sps:$4 sm:$0xff]  }
 0x16b   :  { %v1973_v46 = vpop.eup %1972 }
 0x16c   :  { %v207_v47 = vmul.f32 %v1973_v46, %v185_v45  ;;  %v1962_v45 = vld [vmem:[#allocation8 + $0x1c0] ss:$16 sps:$4 sm:$0xff]   ;;  %v1965_v46 = vld [vmem:[#allocation8 + $0x1c8] ss:$16 sps:$4 sm:$0xff]  }
 0x16d   :  { %1622 = vmatpush1.bf16.msra.mxu0 %v1962_v45 }
 0x16e   :  { %v208_v49 = vmul.f32 %v207_v47, %v193_v38  ;;  %v210_v50 = vmul.f32 %v207_v47, %v181_v24  ;;  %v1933_v24 = vld [vmem:[#allocation8 + $0x12c] ss:$16 sps:$4 sm:$0xff]   ;;  %v1953_v38 = vld [vmem:[#allocation8 + $0x188] ss:$16 sps:$4 sm:$0xff]   ;;  %v1966_v47 = vld [vmem:[#allocation8 + $0x1e4] ss:$16 sps:$4 sm:$0xff]  }
 0x16f   :  { %1624 = vmatprep.subr.bf16.mxu0 %v1966_v47 }
 0x170   :  { %v209_v51 = vsub.f32 %v186_v48, %v208_v49  ;;  %v1969_v48 = vld [vmem:[#allocation8 + $0x1ec] ss:$16 sps:$4 sm:$0xff]   ;;  %v1968_v49 = vld [vmem:[#allocation8 + $0x1e0] ss:$16 sps:$4 sm:$0xff]  }
 0x171   :  { %1626 = vmatpush1.bf16.msra.mxu0 %v1968_v49 }
 0x172   :  { %v211_v52 = vadd.f32 %v210_v50, %v209_v51  ;;  %v1971_v50 = vld [vmem:[#allocation8 + $0x1e8] ss:$16 sps:$4 sm:$0xff]  }
 0x174   :  { %v212_v54 = vmax.f32 %v211_v52, 0.0 }
 0x176   :  { %326 = vmatmul.mubr.f32.vlgmr.msra.gmra.mrb[0].mxu1 %v212_v54 }
 0x177   :  { %1630 = vmatpush1.bf16.msra.mxu1 %v1881_v53 }
 0x178   :  { %1632 = vmatprep.subr.bf16.mxu1 %v1885_v56 }
 0x17b   :  { %1634 = vmatpush1.bf16.msra.mxu1 %v1887_v58 }
 0x17c   :  { %1636 = vmatprep.subr.bf16.mxu1 %v1891_v60 }
 0x17f   :  { %1638 = vmatpush1.bf16.msra.mxu1 %v1893_v62 }
 0x180   :  { %1640 = vmatprep.subr.bf16.mxu1 %v1897_v0 }
 0x183   :  { %1642 = vmatpush1.bf16.msra.mxu1 %v1899_v2 }
 0x184   :  { %1644 = vmatprep.subr.bf16.mxu1 %v1903_v4 }
 0x187   :  { %1646 = vmatpush1.bf16.msra.mxu1 %v1905_v6 }
 0x188   :  { %1648 = vmatprep.subr.bf16.mxu1 %v1909_v8 }
 0x18b   :  { %1650 = vmatpush1.bf16.msra.mxu1 %v1911_v10 }
 0x18c   :  { %1652 = vmatprep.subr.bf16.mxu1 %v1915_v12 }
 0x18f   :  { %1654 = vmatpush1.bf16.msra.mxu1 %v1917_v14 }
 0x190   :  { %1656 = vmatprep.subr.bf16.mxu1 %v1921_v16 }
 0x193   :  { %1658 = vmatpush1.bf16.msra.mxu1 %v1923_v18 }
 0x194   :  { %1660 = vmatprep.subr.bf16.mxu1 %v1927_v20 }
 0x197   :  { %1662 = vmatpush1.bf16.msra.mxu1 %v1929_v22 }
 0x198   :  { %1664 = vmatprep.subr.bf16.mxu1 %v1933_v24 }
 0x19b   :  { %1666 = vmatpush1.bf16.msra.mxu1 %v1935_v26 }
 0x19c   :  { %1668 = vmatprep.subr.bf16.mxu1 %v1939_v28  ;;  %v380_v28 = vunpack.c.l.s4 %v2165_v27 }
 0x19f   :  { %1670 = vmatpush1.bf16.msra.mxu1 %v1941_v30  ;;  %v381_v30 = vunpack.c.0.s8 %v380_v28 }
 0x1a0   :  { %1672 = vmatprep.subr.bf16.mxu1 %v1945_v32 }
 0x1a1   :  { %v2290_v33 = vsub.s32 %v381_v30, %v2287_v31 }
 0x1a3   :  { %1674 = vmatpush1.bf16.msra.mxu1 %v1947_v34 }
 0x1a4   :  { %1676 = vmatprep.subr.bf16.mxu1 %v1951_v36 }
 0x1a7   :  { %1678 = vmatpush1.bf16.msra.mxu1 %v1953_v38 }
 0x1a8   :  { %1680 = vmatprep.subr.bf16.mxu1 %v1957_v41 }
 0x1ab   :  { %1682 = vmatpush1.bf16.msra.mxu1 %v1959_v42 }
 0x1ac   :  { %1684 = vmatprep.subr.bf16.mxu1 %v1963_v44 }
 0x1af   :  { %1686 = vmatpush1.bf16.msra.mxu1 %v1965_v46 }
 0x1b0   :  { %1688 = vmatprep.subr.bf16.mxu1 %v1969_v48 }
 0x1b3   :  { %1690 = vmatpush1.bf16.msra.mxu1 %v1971_v50  ;;  %v335_v50 = vld [vmem:[#allocation11 + $0x3] ss:$8 sm:$0x3] }
 0x249   :  { %v327_v51 = vpop.f32.mrb[0].mxu1 }
 0x24a   :  { %v336_v52 = vrot.slane %v327_v51, 4  ;;  %v350_v53 = vmul.f32 %v327_v51, %v327_v51  ;;  %v329_v54 = vpop.f32.mrb[1].mxu1 }
 0x24b   :  { %v342_v55 = vrot.slane %v329_v54, 4  ;;  %v351_v56 = vmul.f32 %v329_v54, %v329_v54 }
 0x24c   :  { %v337_v57 = vadd.f32 %v336_v52, %v327_v51  ;;  %v352_v58 = vrot.slane %v350_v53, 4 }
 0x24d   :  { %v343_v59 = vadd.f32 %v342_v55, %v329_v54  ;;  %v358_v60 = vrot.slane %v351_v56, 4 }
 0x24e   :  { %v338_v61 = vrot.slane %v337_v57, 2  ;;  %v353_v62 = vadd.f32 %v352_v58, %v350_v53 }
 0x24f   :  { %v344_v63 = vrot.slane %v343_v59, 2  ;;  %v359_v0 = vadd.f32 %v358_v60, %v351_v56 }
 0x250   :  { %v339_v1 = vadd.f32 %v338_v61, %v337_v57  ;;  %v354_v2 = vrot.slane %v353_v62, 2  ;;  %v1280_v61 = vld [vmem:[#allocation10] sm:$0xff]  }
 0x251   :  { %v345_v3 = vadd.f32 %v344_v63, %v343_v59  ;;  %v360_v4 = vrot.slane %v359_v0, 2  ;;  %v1416_v63 = vld [vmem:[#allocation10 + $0x48] sm:$0xff]  }
 0x252   :  { %v340_v5 = vrot.slane %v339_v1, 1  ;;  %v355_v6 = vadd.f32 %v354_v2, %v353_v62  ;;  %v1423_v62 = vld [vmem:[#allocation10 + $0x80] sm:$0xff]   ;;  %v1424_v2 = vld [vmem:[#allocation10 + $0x88] sm:$0xff]  }
 0x253   :  { %v346_v7 = vrot.slane %v345_v3, 1  ;;  %v361_v8 = vadd.f32 %v360_v4, %v359_v0  ;;  %v1432_v0 = vld [vmem:[#allocation10 + $0xc8] sm:$0xff]   ;;  %v1433_v4 = vld [vmem:[#allocation10 + $0xd0] sm:$0xff]  }
 0x254   :  { %v341_v9 = vadd.f32 %v340_v5, %v339_v1  ;;  %v356_v10 = vrot.slane %v355_v6, 1  ;;  %v1408_v1 = vld [vmem:[#allocation10 + $0x8] sm:$0xff]   ;;  %v1409_v5 = vld [vmem:[#allocation10 + $0x10] sm:$0xff]  }
 0x255   :  { %v347_v11 = vadd.f32 %v346_v7, %v345_v3  ;;  %v362_v12 = vrot.slane %v361_v8, 1  ;;  %v1417_v3 = vld [vmem:[#allocation10 + $0x50] sm:$0xff]   ;;  %v1418_v7 = vld [vmem:[#allocation10 + $0x58] sm:$0xff]  }
 0x256   :  { %v348_v13 = vmul.f32 0.125, %v341_v9  ;;  %v357_v14 = vadd.f32 %v356_v10, %v355_v6  ;;  %v1425_v6 = vld [vmem:[#allocation10 + $0x90] sm:$0xff]   ;;  %v1410_v9 = vld [vmem:[#allocation10 + $0x18] sm:$0xff]  }
 0x257   :  { %v349_v15 = vmul.f32 0.125, %v347_v11  ;;  %v363_v16 = vadd.f32 %v362_v12, %v361_v8  ;;  %v1434_v8 = vld [vmem:[#allocation10 + $0xd8] sm:$0xff]   ;;  %v1419_v11 = vld [vmem:[#allocation10 + $0x60] sm:$0xff]  }
 0x258   :  { %v364_v17 = vmul.f32 0.125, %v357_v14  ;;  %v366_v18 = vmul.f32 %v348_v13, %v348_v13  ;;  %v1426_v10 = vld [vmem:[#allocation10 + $0x98] sm:$0xff]   ;;  %v1435_v12 = vld [vmem:[#allocation10 + $0xe0] sm:$0xff]  }
 0x259   :  { %v365_v19 = vmul.f32 0.125, %v363_v16  ;;  %v367_v20 = vmul.f32 %v349_v15, %v349_v15  ;;  %v1427_v14 = vld [vmem:[#allocation10 + $0xa0] sm:$0xff]   ;;  %v1436_v16 = vld [vmem:[#allocation10 + $0xe8] sm:$0xff]  }
 0x25a   :  { %v368_v21 = vsub.f32 %v364_v17, %v366_v18  ;;  %v1412_v17 = vld [vmem:[#allocation10 + $0x28] sm:$0xff]  }
 0x25b   :  { %v369_v22 = vsub.f32 %v365_v19, %v367_v20  ;;  %v1428_v18 = vld [vmem:[#allocation10 + $0xa8] sm:$0xff]   ;;  %v1421_v19 = vld [vmem:[#allocation10 + $0x70] sm:$0xff]  }
 0x25c   :  { %v370_v23 = vmax.f32 %v368_v21, 0.0  ;;  %v1437_v20 = vld [vmem:[#allocation10 + $0xf0] sm:$0xff]  }
 0x25d   :  { %v371_v24 = vmax.f32 %v369_v22, 0.0  ;;  %v1413_v21 = vld [vmem:[#allocation10 + $0x30] sm:$0xff]  }
 0x25e   :  { %v372_v25 = vadd.f32 1e-05, %v370_v23  ;;  %v1429_v22 = vld [vmem:[#allocation10 + $0xb0] sm:$0xff]   ;;  %v1422_v23 = vld [vmem:[#allocation10 + $0x78] sm:$0xff]  }
 0x25f   :  { %v373_v26 = vadd.f32 1e-05, %v371_v24  ;;  %v1438_v24 = vld [vmem:[#allocation10 + $0xf8] sm:$0xff]  }
 0x260   :  { %1974 = vrsqrt.f32 %v372_v25  ;;  %v1414_v25 = vld [vmem:[#allocation10 + $0x38] sm:$0xff]  }
 0x261   :  { %1976 = vrsqrt.f32 %v373_v26  ;;  %v1430_v26 = vld [vmem:[#allocation10 + $0xb8] sm:$0xff]  }
 0x26a   :  { %v1975_v32 = vpop.eup %1974 }
 0x26b   :  { %v1977_v34 = vpop.eup %1976 }
 0x26c   :  { %v378_v35 = vcombine.low %v1975_v32, %v1977_v34 }
 0x26e   :  { %v385_v36 = vrot.slane %v378_v35, %v2290_v33 }
 0x270   :  { %v392_v38 = vrot.slane %v385_v36, %v2290_v33 }
 0x272   :  { %v394_v41 = vmul.f32 %v392_v38, %v333_v37 }
 0x274   :  { %v399_v42 = vrot.slane %v394_v41, %v2295_v39  ;;  %v403_v43 = vrot.slane %v394_v41, %v2298_v40 }
 0x276   :  { %v406_v44 = vmul.f32 %v399_v42, %v348_v13  ;;  %v407_v45 = vmul.f32 %v403_v43, %v349_v15  ;;  %v428_v46 = vmul.f32 %v403_v43, %v329_v54  ;;  %v427_v47 = vmul.f32 %v399_v42, %v327_v51  ;;  %v1415_v51 = vld [vmem:[#allocation10 + $0x40] sm:$0xff]   ;;  %v1420_v15 = vld [vmem:[#allocation10 + $0x68] sm:$0xff]  }
 0x277   :  { %v1431_v54 = vld [vmem:[#allocation10 + $0xc0] sm:$0xff]   ;;  %1692 = vmatprep.subr.bf16.mxu0 %v1415_v51 }
 0x278   :  { %v410_v48 = vcombine.low %v406_v44, %v407_v45  ;;  %1724 = vmatprep.subr.bf16.mxu1 %v1431_v54  ;;  %v1411_v13 = vld [vmem:[#allocation10 + $0x20] sm:$0xff]  }
 0x27a   :  { %v417_v49 = vrot.slane %v410_v48, %v2290_v33 }
 0x27c   :  { %v424_v52 = vrot.slane %v417_v49, %v2290_v33 }
 0x27e   :  { %v426_v53 = vsub.f32 %v335_v50, %v424_v52 }
 0x280   :  { %v437_v55 = vrot.slane %v426_v53, %v2298_v40  ;;  %v433_v56 = vrot.slane %v426_v53, %v2295_v39 }
 0x282   :  { %v441_v57 = vadd.f32 %v437_v55, %v428_v46  ;;  %v440_v58 = vadd.f32 %v433_v56, %v427_v47 }
 0x284   :  { %v443_v59 = vmax.f32 %v441_v57, 0.0  ;;  %v442_v60 = vmax.f32 %v440_v58, 0.0 }
 0x286   :  { %700 = vmatprep.mubr.f32.mxu0 %v443_v59  ;;  %771 = vmatprep.mubr.f32.mxu1 %v443_v59 }
 0x287   :  { %701 = vmatmul.mubr.f32.vlgmr.msra.gmra.mrb[2].mxu0 %v442_v60  ;;  %772 = vmatmul.mubr.f32.vlgmr.msra.gmra.mrb[2].mxu1 %v442_v60 }
 0x288   :  { %1694 = vmatpush3.bf16.msra.mxu0 %v1280_v61  ;;  %1726 = vmatpush3.bf16.msra.mxu1 %v1423_v62 }
 0x289   :  { %1696 = vmatprep.subr.bf16.mxu0 %v1416_v63  ;;  %1728 = vmatprep.subr.bf16.mxu1 %v1432_v0 }
 0x28c   :  { %1698 = vmatpush3.bf16.msra.mxu0 %v1408_v1  ;;  %1730 = vmatpush3.bf16.msra.mxu1 %v1424_v2 }
 0x28d   :  { %1700 = vmatprep.subr.bf16.mxu0 %v1417_v3  ;;  %1732 = vmatprep.subr.bf16.mxu1 %v1433_v4 }
 0x290   :  { %1702 = vmatpush3.bf16.msra.mxu0 %v1409_v5  ;;  %1734 = vmatpush3.bf16.msra.mxu1 %v1425_v6 }
 0x291   :  { %1704 = vmatprep.subr.bf16.mxu0 %v1418_v7  ;;  %1736 = vmatprep.subr.bf16.mxu1 %v1434_v8 }
 0x294   :  { %1706 = vmatpush3.bf16.msra.mxu0 %v1410_v9  ;;  %1738 = vmatpush3.bf16.msra.mxu1 %v1426_v10 }
 0x295   :  { %1708 = vmatprep.subr.bf16.mxu0 %v1419_v11  ;;  %1740 = vmatprep.subr.bf16.mxu1 %v1435_v12 }
 0x298   :  { %1710 = vmatpush3.bf16.msra.mxu0 %v1411_v13  ;;  %1742 = vmatpush3.bf16.msra.mxu1 %v1427_v14 }
 0x299   :  { %1712 = vmatprep.subr.bf16.mxu0 %v1420_v15  ;;  %1744 = vmatprep.subr.bf16.mxu1 %v1436_v16 }
 0x29c   :  { %1714 = vmatpush3.bf16.msra.mxu0 %v1412_v17  ;;  %1746 = vmatpush3.bf16.msra.mxu1 %v1428_v18 }
 0x29d   :  { %1716 = vmatprep.subr.bf16.mxu0 %v1421_v19  ;;  %1748 = vmatprep.subr.bf16.mxu1 %v1437_v20 }
 0x2a0   :  { %1718 = vmatpush3.bf16.msra.mxu0 %v1413_v21  ;;  %1750 = vmatpush3.bf16.msra.mxu1 %v1429_v22 }
 0x2a1   :  { %1720 = vmatprep.subr.bf16.mxu0 %v1422_v23  ;;  %1752 = vmatprep.subr.bf16.mxu1 %v1438_v24 }
 0x2a4   :  { %1722 = vmatpush3.bf16.msra.mxu0 %v1414_v25  ;;  %1754 = vmatpush3.bf16.msra.mxu1 %v1430_v26 }
 0x35a   :  { %v2306_v27 = vpop.f32.mrb[2].mxu0  ;;  %v2308_v28 = vpop.f32.mrb[2].mxu1 }
 0x35b   :  { %v782_v29 = vrot.slane %v2306_v27, 4  ;;  %v810_v30 = vmul.f32 %v2306_v27, %v2306_v27  ;;  %v794_v32 = vrot.slane %v2308_v28, 4  ;;  %v812_v34 = vmul.f32 %v2308_v28, %v2308_v28  ;;  %v2316_v35 = vpop.f32.mrb[3].mxu0  ;;  %v2318_v36 = vpop.f32.mrb[3].mxu1 }
 0x35c   :  { %v788_v37 = vrot.slane %v2316_v35, 4  ;;  %v811_v38 = vmul.f32 %v2316_v35, %v2316_v35  ;;  %v800_v41 = vrot.slane %v2318_v36, 4  ;;  %v813_v42 = vmul.f32 %v2318_v36, %v2318_v36 }
 0x35d   :  { %v783_v43 = vadd.f32 %v782_v29, %v2306_v27  ;;  %v814_v44 = vrot.slane %v810_v30, 4  ;;  %v795_v45 = vadd.f32 %v794_v32, %v2308_v28  ;;  %v826_v46 = vrot.slane %v812_v34, 4 }
 0x35e   :  { %v789_v47 = vadd.f32 %v788_v37, %v2316_v35  ;;  %v820_v48 = vrot.slane %v811_v38, 4  ;;  %v801_v49 = vadd.f32 %v800_v41, %v2318_v36  ;;  %v832_v50 = vrot.slane %v813_v42, 4 }
 0x35f   :  { %v784_v52 = vrot.slane %v783_v43, 2  ;;  %v815_v53 = vadd.f32 %v814_v44, %v810_v30  ;;  %v796_v55 = vrot.slane %v795_v45, 2  ;;  %v827_v56 = vadd.f32 %v826_v46, %v812_v34 }
 0x360   :  { %v790_v57 = vrot.slane %v789_v47, 2  ;;  %v821_v58 = vadd.f32 %v820_v48, %v811_v38  ;;  %v802_v59 = vrot.slane %v801_v49, 2  ;;  %v833_v60 = vadd.f32 %v832_v50, %v813_v42 }
 0x361   :  { %v785_v51 = vadd.f32 %v784_v52, %v783_v43  ;;  %v816_v54 = vrot.slane %v815_v53, 2  ;;  %v797_v61 = vadd.f32 %v796_v55, %v795_v45  ;;  %v828_v62 = vrot.slane %v827_v56, 2 }
 0x362   :  { %v791_v63 = vadd.f32 %v790_v57, %v789_v47  ;;  %v822_v0 = vrot.slane %v821_v58, 2  ;;  %v803_v1 = vadd.f32 %v802_v59, %v801_v49  ;;  %v834_v2 = vrot.slane %v833_v60, 2 }
 0x363   :  { %v786_v3 = vrot.slane %v785_v51, 1  ;;  %v817_v4 = vadd.f32 %v816_v54, %v815_v53  ;;  %v798_v5 = vrot.slane %v797_v61, 1  ;;  %v829_v6 = vadd.f32 %v828_v62, %v827_v56 }
 0x364   :  { %v792_v7 = vrot.slane %v791_v63, 1  ;;  %v823_v8 = vadd.f32 %v822_v0, %v821_v58  ;;  %v804_v9 = vrot.slane %v803_v1, 1  ;;  %v835_v10 = vadd.f32 %v834_v2, %v833_v60  ;;  %v779_v0 = vld [vmem:[#allocation11 + $0x4] ss:$8 sm:$0xf] }
 0x365   :  { %v787_v11 = vadd.f32 %v786_v3, %v785_v51  ;;  %v818_v12 = vrot.slane %v817_v4, 1  ;;  %v799_v13 = vadd.f32 %v798_v5, %v797_v61  ;;  %v830_v14 = vrot.slane %v829_v6, 1 }
 0x366   :  { %v793_v15 = vadd.f32 %v792_v7, %v791_v63  ;;  %v824_v16 = vrot.slane %v823_v8, 1  ;;  %v805_v17 = vadd.f32 %v804_v9, %v803_v1  ;;  %v836_v18 = vrot.slane %v835_v10, 1 }
 0x367   :  { %v806_v19 = vmul.f32 0.125, %v787_v11  ;;  %v819_v20 = vadd.f32 %v818_v12, %v817_v4  ;;  %v808_v21 = vmul.f32 0.125, %v799_v13  ;;  %v831_v22 = vadd.f32 %v830_v14, %v829_v6 }
 0x368   :  { %v807_v23 = vmul.f32 0.125, %v793_v15  ;;  %v825_v24 = vadd.f32 %v824_v16, %v823_v8  ;;  %v809_v25 = vmul.f32 0.125, %v805_v17  ;;  %v837_v26 = vadd.f32 %v836_v18, %v835_v10 }
 0x369   :  { %v838_v29 = vmul.f32 0.125, %v819_v20  ;;  %v842_v30 = vmul.f32 %v806_v19, %v806_v19  ;;  %v840_v32 = vmul.f32 0.125, %v831_v22  ;;  %v844_v34 = vmul.f32 %v808_v21, %v808_v21 }
 0x36a   :  { %v839_v37 = vmul.f32 0.125, %v825_v24  ;;  %v843_v38 = vmul.f32 %v807_v23, %v807_v23  ;;  %v841_v41 = vmul.f32 0.125, %v837_v26  ;;  %v845_v42 = vmul.f32 %v809_v25, %v809_v25  ;;  %v781_v24 = vld [vmem:[#allocation11 + $0x5] ss:$8 sm:$0xf] }
 0x36b   :  { %v846_v43 = vsub.f32 %v838_v29, %v842_v30  ;;  %v848_v44 = vsub.f32 %v840_v32, %v844_v34  ;;  %v903_v2 = vsub.s32 2, %v2287_v31  ;;  %v907_v3 = vsub.s32 3, %v2287_v31 }
 0x36c   :  { %v847_v45 = vsub.f32 %v839_v37, %v843_v38  ;;  %v849_v46 = vsub.f32 %v841_v41, %v845_v42 }
 0x36d   :  { %v850_v47 = vmax.f32 %v846_v43, 0.0  ;;  %v852_v48 = vmax.f32 %v848_v44, 0.0 }
 0x36e   :  { %v851_v49 = vmax.f32 %v847_v45, 0.0  ;;  %v853_v50 = vmax.f32 %v849_v46, 0.0 }
 0x36f   :  { %v854_v52 = vadd.f32 1e-05, %v850_v47  ;;  %v856_v53 = vadd.f32 1e-05, %v852_v48 }
 0x370   :  { %v855_v55 = vadd.f32 1e-05, %v851_v49  ;;  %v857_v56 = vadd.f32 1e-05, %v853_v50 }
 0x371   :  { %1978 = vrsqrt.f32 %v854_v52 }
 0x372   :  { %1980 = vrsqrt.f32 %v856_v53 }
 0x373   :  { %1982 = vrsqrt.f32 %v855_v55 }
 0x374   :  { %1984 = vrsqrt.f32 %v857_v56 }
 0x37b   :  { %v1979_v57 = vpop.eup %1978 }
 0x37c   :  { %v1981_v58 = vpop.eup %1980 }
 0x37d   :  { %v1983_v59 = vpop.eup %1982 }
 0x37e   :  { %v1985_v60 = vpop.eup %1984  ;;  %v866_v51 = vcombine.low %v1979_v57, %v1983_v59 }
 0x37f   :  { %v867_v54 = vcombine.low %v1981_v58, %v1985_v60 }
 0x380   :  { %v874_v61 = vrot.slane %v866_v51, %v2290_v33 }
 0x381   :  { %v881_v62 = vrot.slane %v867_v54, %v2290_v33 }
 0x383   :  { %v882_v63 = vcombine.low %v874_v61, %v881_v62 }
 0x385   :  { %v889_v1 = vrot.slane %v882_v63, %v2290_v33 }
 0x387   :  { %v891_v4 = vmul.f32 %v889_v1, %v779_v0 }
 0x389   :  { %v904_v5 = vrot.slane %v891_v4, %v903_v2  ;;  %v908_v6 = vrot.slane %v891_v4, %v907_v3  ;;  %v896_v7 = vrot.slane %v891_v4, %v2295_v39  ;;  %v900_v8 = vrot.slane %v891_v4, %v2298_v40 }
 0x38b   :  { %v915_v9 = vmul.f32 %v904_v5, %v808_v21  ;;  %v916_v10 = vmul.f32 %v908_v6, %v809_v25  ;;  %v950_v11 = vmul.f32 %v908_v6, %v2318_v36  ;;  %v913_v12 = vmul.f32 %v896_v7, %v806_v19 }
 0x38c   :  { %v914_v13 = vmul.f32 %v900_v8, %v807_v23  ;;  %v948_v14 = vmul.f32 %v900_v8, %v2316_v35  ;;  %v947_v15 = vmul.f32 %v896_v7, %v2306_v27  ;;  %v949_v16 = vmul.f32 %v904_v5, %v2308_v28 }
 0x38d   :  { %v922_v31 = vcombine.low %v915_v9, %v916_v10 }
 0x38e   :  { %v921_v17 = vcombine.low %v913_v12, %v914_v13 }
 0x38f   :  { %v936_v18 = vrot.slane %v922_v31, %v2290_v33 }
 0x390   :  { %v929_v20 = vrot.slane %v921_v17, %v2290_v33 }
 0x392   :  { %v937_v22 = vcombine.low %v929_v20, %v936_v18 }
 0x394   :  { %v944_v21 = vrot.slane %v937_v22, %v2290_v33 }
 0x396   :  { %v946_v25 = vsub.f32 %v781_v24, %v944_v21 }
 0x398   :  { %v959_v36 = vrot.slane %v946_v25, %v2298_v40  ;;  %v967_v19 = vrot.slane %v946_v25, %v907_v3  ;;  %v955_v35 = vrot.slane %v946_v25, %v2295_v39  ;;  %v963_v23 = vrot.slane %v946_v25, %v903_v2  ;;  %v1248_v39 = vld [vmem:[#allocation11 + $0x6] ss:$0 sm:$0xff] }
 0x39a   :  { %v973_v27 = vadd.f32 %v959_v36, %v948_v14  ;;  %v975_v26 = vadd.f32 %v967_v19, %v950_v11  ;;  %v972_v28 = vadd.f32 %v955_v35, %v947_v15  ;;  %v974_v29 = vadd.f32 %v963_v23, %v949_v16 }
 0x39c   :  { %v977_v30 = vmax.f32 %v973_v27, 0.0  ;;  %v979_v32 = vmax.f32 %v975_v26, 0.0  ;;  %v976_v34 = vmax.f32 %v972_v28, 0.0  ;;  %v978_v37 = vmax.f32 %v974_v29, 0.0 }
 0x39e   :  { %1172 = vmatprep.mubr.f32.mxu0 %v977_v30  ;;  %1242 = vmatprep.mubr.f32.mxu1 %v979_v32 }
 0x39f   :  { %1173 = vmatmul.mubr.f32.vlgmr.msra.gmra.mrb[4].mxu0 %v976_v34  ;;  %1243 = vmatmul.mubr.f32.vlgmr.msra.gmra.mrb[4].mxu1 %v978_v37 }
 0x472   :  { %v1476_v33 = vpop.f32.mrb[4].mxu0  ;;  %v1511_v38 = vpop.f32.mrb[4].mxu1 }
 0x473   :  { %v1477_v41 = vpop.f32.mrb[5].mxu0  ;;  %v1512_v40 = vpop.f32.mrb[5].mxu1 }
 0x474   :  { %v1478_v42 = vadd.f32 %v1477_v41, %v1476_v33  ;;  %v1513_v43 = vadd.f32 %v1512_v40, %v1511_v38 }
 0x476   :  { %v1245_v44 = vadd.f32 %v1513_v43, %v1478_v42 }
 0x478   :  { %v1249_v45 = vadd.f32 %v1248_v39, %v1245_v44 }
 0x47a   :  { %1251 = vst.msk [vmem:[#allocation13] sm:$0xff] %vm1250_vm2, %v1249_v45 }
 0x47b   :  { %2129 = shalt.err (!%p2126_p10)
}
 0x47c   :  { %s2130_s24 = scalar_lea.hbm %s2364_s6, 128 }
 0x47d   :  { %p2131_p11 = scmp.ne.s32.totalorder %s2364_s6, %s2130_s24  ;;  %p2134_p12 = scmp.lt.u32.totalorder %s2130_s24, %s2364_s6 }
 0x47f   :  { %p2136_p13 = pnand %p2134_p12, %p2131_p11 }
 0x481   :  { %2139 = shalt.err (!%p2136_p13)
}
 0x482   :  { %1261 = dma.vmem_to_hbm [thread:$0]  %s1259_s8, 128, %s2364_s6, [#allocation4]  }
 0x483   :  { %2148 = dma.done.wait [#allocation4], 128  }
 0x484   :  { %2149 = vsyncadd [#allocation4], 4294967168 }
 0x485   :  { %1265 = vsyncpa [#allocation3], 1 }
 0x486   :  { %1266 = vsyncpa [#allocation6], 1 }
 0x487   :  { %1267 = vsyncpa [#allocation9], 1 }
 0x488   :  { %1268 = vsyncpa [#allocation12], 1 }
 0x489   :  { %1269 = vsyncpa [#allocation4], 1 }

</bundles_post_ra>
